<compile_context>
chip_gen: v6e
topology: v6e:2x2x1
jax: 0.10.0
libtpu: 0.0.40
codegen_flags: <defaults>
</compile_context>

<pallas_src>
import functools

import jax
import jax.numpy as jnp
from jax.experimental import pallas as pl
from jax.experimental.pallas import tpu as pltpu

LANES = 128  # pad tiny feature dims up to one full vreg lane width


def _round_up(n: int, m: int) -> int:
    return ((n + m - 1) // m) * m


def _pad2d(arr, rows, cols, dtype):
    r, c = arr.shape
    return jnp.pad(arr.astype(dtype), ((0, rows - r), (0, cols - c)))


def _pad1d(arr, n, dtype):
    return jnp.pad(arr.astype(dtype), (0, n - arr.shape[0]))


# ---------------------------------------------------------------------------
# Pallas kernel:  out = act(A @ B + bias) [@ proj]
# grid = (M // tm, K // tk); the output tile stays resident across K.
# ---------------------------------------------------------------------------
def _gcn_matmul_kernel(*refs, relu, has_bias, has_proj):
    it = iter(refs)
    a_ref = next(it)
    b_ref = next(it)
    bias_ref = next(it) if has_bias else None
    proj_ref = next(it) if has_proj else None
    o_ref = next(it)
    acc_ref = next(it)

    @pl.when(pl.program_id(1) == 0)
    def _init():
        acc_ref[...] = jnp.zeros_like(acc_ref)

    acc_ref[...] += jnp.dot(
        a_ref[...], b_ref[...], preferred_element_type=jnp.float32
    )

    @pl.when(pl.program_id(1) == pl.num_programs(1) - 1)
    def _epilogue():
        out = acc_ref[...]
        if has_bias:                       # static Python flags, baked at trace
            out = out + bias_ref[...]
        if relu:
            out = jnp.maximum(out, 0.0)
        if has_proj:                       # fused (tm, H) @ (H, C) projection
            out = jnp.dot(
                out.astype(proj_ref.dtype), proj_ref[...],
                preferred_element_type=jnp.float32,
            )
        o_ref[...] = out.astype(o_ref.dtype)


def matmul_fused(a, b, bias=None, proj=None, *, relu=False, tm=512, tk=512,
                 out_dtype=jnp.float32):
    """out = act(a @ b + bias) [@ proj] via a tiled Pallas TPU kernel.

    M and K must be multiples of (tm, tk) after clamping tm/tk to M/K —
    callers pad their operands (see gcn_forward)."""
    M, K = a.shape
    K2, Ni = b.shape
    assert K == K2, (a.shape, b.shape)
    tm = min(tm, M)
    tk = min(tk, K)
    assert M % tm == 0 and K % tk == 0, ("pad M/K to tile multiples", M, K, tm, tk)

    has_bias = bias is not None
    has_proj = proj is not None
    No = proj.shape[1] if has_proj else Ni

    inputs = [a, b]
    in_specs = [
        pl.BlockSpec((tm, tk), lambda i, k: (i, k)),   # A tile
        pl.BlockSpec((tk, Ni), lambda i, k: (k, 0)),   # B tile (full N: N is small)
    ]
    if has_bias:
        assert bias.shape == (Ni,)
        inputs.append(bias.reshape(1, Ni).astype(jnp.float32))
        in_specs.append(pl.BlockSpec((1, Ni), lambda i, k: (0, 0)))
    if has_proj:
        assert proj.shape[0] == Ni
        inputs.append(proj)
        in_specs.append(pl.BlockSpec((Ni, No), lambda i, k: (0, 0)))

    flops = 2 * M * K * Ni + (2 * M * Ni * No if has_proj else 0)
    bytes_accessed = (
        a.size * a.dtype.itemsize
        + b.size * b.dtype.itemsize
        + M * No * jnp.dtype(out_dtype).itemsize
    )

    kernel = functools.partial(
        _gcn_matmul_kernel, relu=relu, has_bias=has_bias, has_proj=has_proj
    )
    return pl.pallas_call(
        kernel,
        out_shape=jax.ShapeDtypeStruct((M, No), out_dtype),
        grid_spec=pltpu.PrefetchScalarGridSpec(
            num_scalar_prefetch=0,
            grid=(M // tm, K // tk),
            in_specs=in_specs,
            out_specs=pl.BlockSpec((tm, No), lambda i, k: (i, 0)),
            scratch_shapes=[pltpu.VMEM((tm, Ni), jnp.float32)],
        ),
        compiler_params=pltpu.CompilerParams(
            dimension_semantics=("parallel", "arbitrary")
        ),
        cost_estimate=pl.CostEstimate(
            flops=flops, transcendentals=0, bytes_accessed=bytes_accessed
        ),
    )(*inputs)


# ---------------------------------------------------------------------------
# GCN forward built from the fused Pallas matmul.
# ---------------------------------------------------------------------------
def gcn_forward(a, x, params, *, tile=512, compute_dtype=jnp.bfloat16):
    n_nodes, f_in = x.shape
    hidden = params["w1"].shape[1]
    n_cls = params["w2"].shape[1]

    # Pad node / input-feature dims up to the tile size and the tiny feature
    # dims (hidden, n_classes) up to 128 lanes: lane-dense stores, full MXU
    # columns, evenly-divisible grids.
    n_pad = _round_up(n_nodes, tile)
    f_pad = _round_up(f_in, tile)
    h_pad = _round_up(hidden, LANES)
    c_pad = _round_up(n_cls, LANES)

    a_p = _pad2d(a, n_pad, n_pad, compute_dtype)
    x_p = _pad2d(x, n_pad, f_pad, compute_dtype)
    w1_p = _pad2d(params["w1"], f_pad, h_pad, compute_dtype)
    w2_p = _pad2d(params["w2"], h_pad, c_pad, compute_dtype)
    b1_p = _pad1d(params["b1"], h_pad, jnp.float32)
    b2_p = _pad1d(params["b2"], c_pad, jnp.float32)

    # gc1 part 1: support1 = x @ W1                         (n_pad, h_pad)
    support1 = matmul_fused(x_p, w1_p, tm=tile, tk=tile, out_dtype=compute_dtype)

    # gc1 part 2 + ReLU + fused gc2 projection:
    #   support2 = relu(a @ support1 + b1) @ W2             (n_pad, c_pad)
    # (h never round-trips HBM.)
    support2 = matmul_fused(a_p, support1, bias=b1_p, proj=w2_p, relu=True,
                            tm=tile, tk=tile, out_dtype=compute_dtype)

    # TODO(synk): nn.Dropout(0.5) is identity in eval mode; training-mode
    # stochastic masking (pltpu.prng_*) is intentionally not implemented.

    # gc2: out = a @ support2 + b2                          (n_pad, c_pad)
    out = matmul_fused(a_p, support2, bias=b2_p, tm=tile, tk=tile,
                       out_dtype=jnp.float32)
    return out[:n_nodes, :n_cls]


def gcn_reference(a, x, params, compute_dtype=jnp.bfloat16):
    """Plain-JAX reference matching the kernel's bf16-in / f32-accumulate math."""
    f32 = jnp.float32
    a_c = a.astype(compute_dtype)
    x_c = x.astype(compute_dtype)
    w1 = params["w1"].astype(compute_dtype)
    w2 = params["w2"].astype(compute_dtype)
    s1 = jnp.dot(x_c, w1, preferred_element_type=f32).astype(compute_dtype)
    h = jnp.maximum(jnp.dot(a_c, s1, preferred_element_type=f32) + params["b1"], 0.0)
    s2 = jnp.dot(h.astype(compute_dtype), w2, preferred_element_type=f32)
    s2 = s2.astype(compute_dtype)
    return jnp.dot(a_c, s2, preferred_element_type=f32) + params["b2"]


def init_params(key, in_feats, hidden, n_classes):
    k1, k2, k3, k4 = jax.random.split(key, 4)
    s1 = 1.0 / jnp.sqrt(in_feats)
    s2 = 1.0 / jnp.sqrt(hidden)
    return {
        "w1": jax.random.uniform(k1, (in_feats, hidden), jnp.float32, -s1, s1),
        "b1": jax.random.uniform(k2, (hidden,), jnp.float32, -s1, s1),
        "w2": jax.random.uniform(k3, (hidden, n_classes), jnp.float32, -s2, s2),
        "b2": jax.random.uniform(k4, (n_classes,), jnp.float32, -s2, s2),
    }


if __name__ == "__main__":
    # Small analogue of the original (2708 nodes, 1433 feats, 16 hidden,
    # 7 classes). Deliberately non-tile-aligned to exercise the padding path.
    N_NODES, F_IN, HIDDEN, N_CLASSES = 300, 200, 16, 7

    key = jax.random.PRNGKey(0)
    ka, kx, kp = jax.random.split(key, 3)
    a = jax.random.normal(ka, (N_NODES, N_NODES), jnp.float32)
    x = jax.random.normal(kx, (N_NODES, F_IN), jnp.float32)
    params = init_params(kp, F_IN, HIDDEN, N_CLASSES)

    # tile=256 here: multi-block (2x2) grids at these small shapes and
    # 256-aligned for the v6e/v7x MXU. At full Cora size keep the default 512.
    out = gcn_forward(a, x, params, tile=256)
    out = jax.block_until_ready(out)
    assert out.shape == (N_NODES, N_CLASSES) and out.dtype == jnp.float32

    ref = gcn_reference(a, x, params)
    max_err = float(jnp.max(jnp.abs(out - ref)))
    assert jnp.allclose(out, ref, rtol=2e-2, atol=2e-1), max_err

    print("KERNEL_OK")
</pallas_src>

<mosaic_0001>
module attributes {stable_mosaic.version = 11 : i64} {
  func.func @_gcn_matmul_kernel(%arg0: i32, %arg1: i32, %arg2: memref<256x256xbf16, #tpu.memory_space<vmem>>, %arg3: memref<256x128xbf16, #tpu.memory_space<vmem>>, %arg4: memref<256x128xbf16, #tpu.memory_space<vmem>>, %arg5: memref<256x128xf32, #tpu.memory_space<vmem>>) attributes {dimension_semantics = [#tpu.dimension_semantics<parallel>, #tpu.dimension_semantics<arbitrary>], iteration_bounds = array<i64: 2, 1>, scalar_prefetch = 0 : i64, scratch_operands = 1 : i64, tpu.core_type = #tpu.core_type<tc>, window_params = [{transform_indices = @transform_0, window_bounds = array<i64: 256, 256>}, {transform_indices = @transform_1, window_bounds = array<i64: 256, 128>}, {transform_indices = @transform_2, window_bounds = array<i64: 256, 128>}]} {
    %c0_i32 = arith.constant 0 : i32
    %0 = arith.cmpi eq, %arg1, %c0_i32 : i32
    %1 = arith.extui %0 : i1 to i32
    %c0_i32_0 = arith.constant 0 : i32
    %2 = arith.cmpi ne, %1, %c0_i32_0 : i32
    scf.if %2 {
      %cst_10 = arith.constant 0.000000e+00 : f32
      %12 = vector.broadcast %cst_10 : f32 to vector<256x128xf32>
      %c0_11 = arith.constant 0 : index
      %c0_12 = arith.constant 0 : index
      %13 = vector.load %arg5[%c0_11, %c0_12] : memref<256x128xf32, #tpu.memory_space<vmem>>, vector<256x128xf32>
      tpu.vector_store %arg5[%c0_11, %c0_12], %12 {strides = array<i32>} : memref<256x128xf32, #tpu.memory_space<vmem>>, vector<256x128xf32>,
    } else {
    }
    %c0 = arith.constant 0 : index
    %c0_1 = arith.constant 0 : index
    %3 = vector.load %arg5[%c0, %c0_1] : memref<256x128xf32, #tpu.memory_space<vmem>>, vector<256x128xf32>
    %c0_2 = arith.constant 0 : index
    %c0_3 = arith.constant 0 : index
    %4 = vector.load %arg2[%c0_2, %c0_3] : memref<256x256xbf16, #tpu.memory_space<vmem>>, vector<256x256xbf16>
    %c0_4 = arith.constant 0 : index
    %c0_5 = arith.constant 0 : index
    %5 = vector.load %arg3[%c0_4, %c0_5] : memref<256x128xbf16, #tpu.memory_space<vmem>>, vector<256x128xbf16>
    %cst = arith.constant dense<0.000000e+00> : vector<256x128xf32>
    %6 = tpu.matmul %4, %5, %cst {dimension_numbers = #tpu.dot_dimension_numbers<[1], [0], [0], [1], [0, 0, 1, 1], [], []>} : vector<256x256xbf16>, vector<256x128xbf16>, vector<256x128xf32> -> vector<256x128xf32>
    %7 = arith.addf %3, %6 : vector<256x128xf32>
    %c0_6 = arith.constant 0 : index
    %c0_7 = arith.constant 0 : index
    %8 = vector.load %arg5[%c0_6, %c0_7] : memref<256x128xf32, #tpu.memory_space<vmem>>, vector<256x128xf32>
    tpu.vector_store %arg5[%c0_6, %c0_7], %7 {strides = array<i32>} : memref<256x128xf32, #tpu.memory_space<vmem>>, vector<256x128xf32>,
    %c0_i32_8 = arith.constant 0 : i32
    %9 = arith.cmpi eq, %arg1, %c0_i32_8 : i32
    %10 = arith.extui %9 : i1 to i32
    %c0_i32_9 = arith.constant 0 : i32
    %11 = arith.cmpi ne, %10, %c0_i32_9 : i32
    scf.if %11 {
      %c0_10 = arith.constant 0 : index
      %c0_11 = arith.constant 0 : index
      %12 = vector.load %arg5[%c0_10, %c0_11] : memref<256x128xf32, #tpu.memory_space<vmem>>, vector<256x128xf32>
      %13 = arith.truncf %12 : vector<256x128xf32> to vector<256x128xbf16>
      %c0_12 = arith.constant 0 : index
      %c0_13 = arith.constant 0 : index
      %14 = vector.load %arg4[%c0_12, %c0_13] : memref<256x128xbf16, #tpu.memory_space<vmem>>, vector<256x128xbf16>
      tpu.vector_store %arg4[%c0_12, %c0_13], %13 {strides = array<i32>} : memref<256x128xbf16, #tpu.memory_space<vmem>>, vector<256x128xbf16>,
    } else {
    }
    return
  }
  func.func @transform_0(%arg0: i32, %arg1: i32) -> (i32, i32) {
    %c0_i32 = arith.constant 0 : i32
    return %arg0, %arg1 : i32, i32
  }
  func.func @transform_1(%arg0: i32, %arg1: i32) -> (i32, i32) {
    %c0_i32 = arith.constant 0 : i32
    %c0_i32_0 = arith.constant 0 : i32
    return %arg1, %c0_i32 : i32, i32
  }
  func.func @transform_2(%arg0: i32, %arg1: i32) -> (i32, i32) {
    %c0_i32 = arith.constant 0 : i32
    %c0_i32_0 = arith.constant 0 : i32
    return %arg0, %c0_i32 : i32, i32
  }
}

</mosaic_0001>

<bundles_post_ra>
// kernel: tpu_custom_call.1
= control target key start
LH: loop header
LB: loop body
LE: loop exit
PB: predicated region body
PF: predicated region fallthrough
CT: control target
= control target key end

     0   :  { %7 = vsyncpa [#allocation4], 0  ;;  %s2023_s0 = inlined_call_operand.hbm [shape: bf16[512,256], index: 0, kind: input, shape index: {}]   ;;  %s2024_s1 = inlined_call_operand.hbm [shape: bf16[256,128], index: 1, kind: input, shape index: {}]   ;;  %s2025_s2 = inlined_call_operand.hbm [shape: bf16[512,128], index: 2, kind: output, shape index: {}]  }
   0x1   :  { %9 = vsyncpa [#allocation4 + $0x1], 0 }
   0x2   :  { %10 = vsyncpa [#allocation7], 0 }
   0x3   :  { %11 = vsyncpa [#allocation5], 0 }
   0x4   :  { %13 = vsyncpa [#allocation5 + $0x1], 0  ;;  %s1788_s9 = smov 0   ;;  %s1790_s10 = smov 0  }
   0x5   :  { %s1792_s11 = smov 0   ;;  %s1794_s12 = smov 0  }
   0x6   :  { %s1796_s13 = smov 0   ;;  %s1798_s14 = smov 0  }
   0x7 LB: > { %s1125_s15 = sadd.s32 4294967295, %s1762_s14   ;;  %s1126_s16 = sadd.s32 4294967294, %s1762_s14   ;;  %s1762_s14 = sphi %s1798_s14, %s19_s14   ;;  %s1758_s13 = sphi %s1796_s13, %s2043_s13   ;;  %s1754_s12 = sphi %s1794_s12, %s2042_s12   ;;  %s1750_s11 = sphi %s1792_s11, %s2041_s11   ;;  %s1746_s10 = sphi %s1790_s10, %s2040_s10   ;;  %s1742_s9 = sphi %s1788_s9, %s2039_s9  }
   0x8   : > { %p53_p0 = scmp.ne.s32.totalorder %s1746_s10, %s1742_s9  ;;  %p1822_p1 = scmp.eq.s32.totalorder %s1125_s15, 0 }
   0x9   : > { %p1826_p2 = scmp.eq.s32.totalorder %s1125_s15, 1  ;;  %p109_p3 = scmp.eq.s32.totalorder %s1126_s16, 1 }
   0xa   : > { %p1832_p4 = por %p1822_p1, %p53_p0  ;;  %p1127_p5 = scmp.ge.s32.totalorder %s1762_s14, 1 }
   0xb   : > { %p1837_p6 = por %p109_p3, %p53_p0  ;;  %p116_p7 = scmp.lt.s32.totalorder %s1762_s14, 3 }
   0xc   : > { %s2029_s19 = scalar_select %p1832_p4, 1, 0 }
   0xd   : > { %s2030_s20 = scalar_select %p1837_p6, 1, 0 }
   0xe   : > { %p1842_p8 = pnand %p1127_p5, %p116_p7  ;;  %s1764_s22 = smov [#allocation6]  }
   0xf   : > { %s131_s23 = sshll.u32 %s1764_s22, 4  ;;  %s31_s25 = sadd.s32 1, %s1758_s13  ;;  %s132_s23 = int_to_ptr.vmem [resolvable:$true] %s131_s23 }
  0x10   : > { %p1489_p9 = pneg %p1842_p8  ;;  %s1635_s26 = scalar_lea.vmem %s132_s23, 2048 }
  0x11   : > { %p1636_p13 = scmp.ne.s32.totalorder %s132_s23, %s1635_s26  ;;  %p1643_p5 = scmp.lt.s32.totalorder %s132_s23, %s132_s23 }
  0x12   : > { %p1851_p11 = pnand %p1489_p9, %p1822_p1  ;;  %p1644_p7 = scmp.lt.s32.totalorder %s1635_s26, %s1635_s26 }
  0x14   : > { %p1626_p12 = pneg %p1851_p11  ;;  %p1645_p6 = por %p1644_p7, %p1643_p5 }
  0x16   : > { %p1638_p0 = pnand %p1636_p13, %p1626_p12 }
  0x18   : > { %p1639_p3 = pneg %p1638_p0 }
  0x1a   : > { %p1646_p4 = pnand %p1645_p6, %p1639_p3 }
  0x1c   : > { %1649 = shalt.err (!%p1646_p4)
}
  0x1d   : > { %s1765_s27 = smov 64   ;;  %s1766_s28 = smov 4  }
  0x1e   : > { %1492 = dma.hbm_to_vmem [thread:$0]  (!%p1851_p11), %s2024_s1, 2048, %s132_s23, [#allocation7], %s1765_s27, %s1765_s27, %s1766_s28  }
  0x1f   : > { %p33_p6 = scmp.ge.s32.totalorder %s31_s25, 2  ;;  %s40_s3 = sadd.s32 1, %s1750_s11 }
  0x20   : > { %p47_p4 = scmp.ne.s32.totalorder %s1750_s11, %s1746_s10  ;;  %p48_p9 = scmp.eq.s32.totalorder %s1762_s14, 0 }
  0x21   : > { %s2045_s25 = smov (%p33_p6, %s31_s25), 0  ;;  %p1502_p0 = scmp.lt.s32.totalorder %s1762_s14, 2 }
  0x22   : > { %p1869_p12 = por %p48_p9, %p47_p4  ;;  %p1875_p13 = por %p1826_p2, %p47_p4 }
  0x23   : > { %s35_s6 = ssub.s32 %s1758_s13, %s2045_s25  ;;  %s145_s7 = sand.u32 1, %s1750_s11  }
  0x24   : > { %p38_p11 = scmp.eq.s32.totalorder %s35_s6, 0  ;;  %s1130_s8 = sshll.u32 %s145_s7, 8 }
  0x25   : > { %s1224_s16 = sshll.u32 %s1758_s13, 12  ;;  %s149_s26 = scalar_lea.vmem [#allocation3], %s1130_s8 }
  0x26   : > { %s1884_s15 = scalar_select %p38_p11, %s1750_s11, %s40_s3  }
  0x27   : > { %s158_s24 = scalar_lea.hbm %s2023_s0, %s1224_s16  ;;  %s159_s27 = sshll.u32 %s149_s26, 4  ;;  %s160_s27 = int_to_ptr.vmem [resolvable:$true] %s159_s27 }
  0x28   : > { %p1892_p2 = pnand %p1502_p0, %p1869_p12  ;;  %s146_s28 = scalar_lea.sflag [#allocation4], %s145_s7 }
  0x29   : > { %s1663_s29 = scalar_lea.vmem %s160_s27, 4096  ;;  %s1767_s30 = smov [#allocation3]  }
  0x2a   : > { %p1652_p3 = pneg %p1892_p2  ;;  %p1664_p5 = scmp.ne.s32.totalorder %s160_s27, %s1663_s29 }
  0x2b   : > { %s1668_s3 = sshll.u32 %s1767_s30, 4  ;;  %s1669_s3 = int_to_ptr.vmem [resolvable:$false] %s1668_s3 }
  0x2c   : > { %p1666_p7 = pnand %p1664_p5, %p1652_p3  ;;  %s1670_s6 = scalar_lea.vmem %s1669_s3, 8192 }
  0x2d   : > { %p1671_p4 = scmp.lt.s32.totalorder %s160_s27, %s1669_s3  ;;  %p1672_p9 = scmp.lt.s32.totalorder %s1670_s6, %s1663_s29 }
  0x2e   : > { %p1667_p6 = pneg %p1666_p7 }
  0x2f   : > { %p1673_p11 = por %p1672_p9, %p1671_p4 }
  0x31   : > { %p1674_p10 = pnand %p1673_p11, %p1667_p6 }
  0x33   : > { %1677 = shalt.err (!%p1674_p10)
}
  0x34   : > { %s1768_s4 = smov 128   ;;  %s1769_s8 = smov 8  }
  0x35   : > { %1496 = dma.hbm_to_vmem [thread:$0]  (!%p1892_p2), %s158_s24, 4096, %s160_s27, %s146_s28, %s1768_s4, %s1768_s4, %s1769_s8  }
  0x36   : > { %171 = sbr.rel (%p1842_p8) target bundleno = 368 (0x170), region = 28  ;;  %s1903_s7 = sand.u32 (!%p1842_p8), 1, %s1746_s10  }
  0x37   : > { %s1135_s16 = sshll.u32 (!%p1842_p8), %s1903_s7, 8  ;;  %s174_s22 = scalar_lea.sflag (!%p1842_p8), [#allocation4], %s1903_s7 }
  0x38   : > { %s1907_s23 = scalar_lea.vmem (!%p1842_p8), [#allocation3], %s1135_s16  ;;  %p2036_p12 = scmp.ne.s32.totalorder (!%p1842_p8), %s2029_s19, 0 }
  0x3b   : > { %1729 = dma.done.wait (%p2036_p12), %s174_s22, 4096  }
  0x3c   : > { %1731 = vsyncadd (%p2036_p12), %s174_s22, 4294963200 }
  0x3d   : > { %1733 = dma.done.wait (%p1822_p1), [#allocation7], 2048  }
  0x3e   : > { %1735 = vsyncadd (%p1822_p1), [#allocation7], 4294965248  ;;  %v1560_v0 = vld [vmem:[#allocation6 + $0x78] sm:$0xff]   ;;  %v1562_v2 = vld [vmem:[#allocation6 + $0x70] sm:$0xff]   ;;  %s1137_s17 = sshll.u32 %s1903_s7, 7  ;;  %s1257_s21 = sshll.u32 %s1754_s12, 11 }
  0x3f   : > { %v1561_v1 = vld [vmem:[#allocation6 + $0x38] sm:$0xff]   ;;  %1353 = vmatprep.subr.bf16.mxu0 %v1560_v0  ;;  %1465 = vmatprep.subr.bf16.mxu1 %v1560_v0  ;;  %v1563_v3 = vld [vmem:[#allocation6 + $0x30] sm:$0xff]   ;;  %v1564_v4 = vld [vmem:[#allocation6 + $0x68] sm:$0xff]   ;;  %s1950_s19 = scalar_lea.vmem [#allocation8], %s1137_s17  ;;  %s1971_s18 = scalar_lea.hbm %s2025_s2, %s1257_s21 }
  0x40   : > { %1354 = vmatpush3.bf16.msra.mxu0 %v1561_v1  ;;  %1473 = vmatpush3.bf16.msra.mxu1 %v1561_v1  ;;  %v1565_v5 = vld [vmem:[#allocation6 + $0x28] sm:$0xff]   ;;  %v1566_v6 = vld [vmem:[#allocation6 + $0x60] sm:$0xff]   ;;  %v1568_v8 = vld [vmem:[#allocation6 + $0x58] sm:$0xff]   ;;  %s1029_s24 = sshll.u32 %s1950_s19, 4  ;;  %s1016_s12 = scalar_lea.sflag [#allocation5], %s1903_s7  ;;  %s1973_s24 = int_to_ptr.vmem [resolvable:$true] %s1029_s24 }
  0x41   : > { %1355 = vmatprep.subr.bf16.mxu0 %v1562_v2  ;;  %1466 = vmatprep.subr.bf16.mxu1 %v1562_v2  ;;  %v1567_v7 = vld [vmem:[#allocation6 + $0x20] sm:$0xff]   ;;  %v1569_v9 = vld [vmem:[#allocation6 + $0x18] sm:$0xff]   ;;  %v1570_v10 = vld [vmem:[#allocation6 + $0x50] sm:$0xff]   ;;  %s1678_s28 = scalar_lea.vmem %s1973_s24, 2048  ;;  %s1770_s29 = smov [#allocation8]  }
  0x42   : > { %v1578_v11 = vld [vmem:[%s1907_s23 + $0x4] ss:$8 sps:$4 sm:$0xff]   ;;  %v1571_v13 = vld [vmem:[#allocation6 + $0x10] sm:$0xff]   ;;  %v1576_v18 = vld [vmem:[%s1907_s23] ss:$8 sps:$4 sm:$0xff]   ;;  %p1679_p1 = scmp.ne.s32.totalorder %s1973_s24, %s1678_s28  ;;  %s1682_s30 = sshll.u32 %s1770_s29, 4  ;;  %s1683_s30 = int_to_ptr.vmem [resolvable:$false] %s1682_s30 }
  0x43   : > { %v1581_v12 = vld [vmem:[%s1907_s23 + $0x84] ss:$8 sps:$4 sm:$0xff]   ;;  %627 = vmatprep.mubr.bf16.mxu0 %v1578_v11  ;;  %v1579_v19 = vld [vmem:[%s1907_s23 + $0x80] ss:$8 sps:$4 sm:$0xff]   ;;  %v1582_v20 = vld [vmem:[%s1907_s23 + $0x14] ss:$8 sps:$4 sm:$0xff]   ;;  %p1685_p0 = scmp.lt.s32.totalorder %s1973_s24, %s1683_s30 }
  0x44   : > { %1356 = vmatpush3.bf16.msra.mxu0 %v1563_v3  ;;  %1474 = vmatpush3.bf16.msra.mxu1 %v1563_v3  ;;  %v1572_v14 = vld [vmem:[#allocation6 + $0x48] sm:$0xff]   ;;  %v1574_v16 = vld [vmem:[#allocation6 + $0x40] sm:$0xff]   ;;  %v1584_v21 = vld [vmem:[%s1907_s23 + $0x94] ss:$8 sps:$4 sm:$0xff]   ;;  %p1680_p8 = pnand %p1679_p1, %p1875_p13  ;;  %s1684_s3 = scalar_lea.vmem %s1683_s30, 4096 }
  0x45   : > { %1357 = vmatprep.subr.bf16.mxu0 %v1564_v4  ;;  %1467 = vmatprep.subr.bf16.mxu1 %v1564_v4  ;;  %v1573_v15 = vld [vmem:[#allocation6 + $0x8] sm:$0xff]   ;;  %v1575_v17 = vld [vmem:[#allocation6] sm:$0xff]   ;;  %v1586_v22 = vld [vmem:[%s1907_s23 + $0x10] ss:$8 sps:$4 sm:$0xff]   ;;  %p1686_p2 = scmp.lt.s32.totalorder %s1684_s3, %s1678_s28 }
  0x46   : > { %691 = vmatprep.mubr.bf16.mxu1 %v1581_v12  ;;  %v1587_v23 = vld [vmem:[%s1907_s23 + $0x90] ss:$8 sps:$4 sm:$0xff]   ;;  %v1588_v24 = vld [vmem:[%s1907_s23 + $0x24] ss:$8 sps:$4 sm:$0xff]   ;;  %v1592_v26 = vld [vmem:[%s1907_s23 + $0x20] ss:$8 sps:$4 sm:$0xff]   ;;  %p1681_p10 = pneg %p1680_p8 }
  0x47   : > { %v1590_v25 = vld [vmem:[%s1907_s23 + $0xa4] ss:$8 sps:$4 sm:$0xff]   ;;  %v1593_v27 = vld [vmem:[%s1907_s23 + $0xa0] ss:$8 sps:$4 sm:$0xff]   ;;  %v1594_v28 = vld [vmem:[%s1907_s23 + $0x34] ss:$8 sps:$4 sm:$0xff]   ;;  %p1687_p3 = por %p1686_p2, %p1685_p0 }
  0x48   : > { %1358 = vmatpush3.bf16.msra.mxu0 %v1565_v5  ;;  %1475 = vmatpush3.bf16.msra.mxu1 %v1565_v5  ;;  %v1596_v29 = vld [vmem:[%s1907_s23 + $0xb4] ss:$8 sps:$4 sm:$0xff]   ;;  %v1598_v30 = vld [vmem:[%s1907_s23 + $0x30] ss:$8 sps:$4 sm:$0xff]   ;;  %v1600_v32 = vld [vmem:[%s1907_s23 + $0x44] ss:$8 sps:$4 sm:$0xff]  }
  0x49   : > { %1359 = vmatprep.subr.bf16.mxu0 %v1566_v6  ;;  %1468 = vmatprep.subr.bf16.mxu1 %v1566_v6  ;;  %v1599_v31 = vld [vmem:[%s1907_s23 + $0xb0] ss:$8 sps:$4 sm:$0xff]   ;;  %v1602_v33 = vld [vmem:[%s1907_s23 + $0xc4] ss:$8 sps:$4 sm:$0xff]   ;;  %v1604_v34 = vld [vmem:[%s1907_s23 + $0x40] ss:$8 sps:$4 sm:$0xff]   ;;  %p1688_p5 = pnand %p1687_p3, %p1681_p10 }
  0x4a   : > { %v1605_v35 = vld [vmem:[%s1907_s23 + $0xc0] ss:$8 sps:$4 sm:$0xff]   ;;  %v1606_v36 = vld [vmem:[%s1907_s23 + $0x54] ss:$8 sps:$4 sm:$0xff]   ;;  %v1610_v38 = vld [vmem:[%s1907_s23 + $0x50] ss:$8 sps:$4 sm:$0xff]  }
  0x4b   : > { %v1608_v37 = vld [vmem:[%s1907_s23 + $0xd4] ss:$8 sps:$4 sm:$0xff]   ;;  %v1611_v39 = vld [vmem:[%s1907_s23 + $0xd0] ss:$8 sps:$4 sm:$0xff]   ;;  %v1612_v40 = vld [vmem:[%s1907_s23 + $0x64] ss:$8 sps:$4 sm:$0xff]  }
  0x4c   : > { %1360 = vmatpush3.bf16.msra.mxu0 %v1567_v7  ;;  %1476 = vmatpush3.bf16.msra.mxu1 %v1567_v7  ;;  %v1614_v41 = vld [vmem:[%s1907_s23 + $0xe4] ss:$8 sps:$4 sm:$0xff]   ;;  %v1616_v42 = vld [vmem:[%s1907_s23 + $0x60] ss:$8 sps:$4 sm:$0xff]   ;;  %v1618_v44 = vld [vmem:[%s1907_s23 + $0x74] ss:$8 sps:$4 sm:$0xff]  }
  0x4d   : > { %1361 = vmatprep.subr.bf16.mxu0 %v1568_v8  ;;  %1469 = vmatprep.subr.bf16.mxu1 %v1568_v8  ;;  %v1617_v43 = vld [vmem:[%s1907_s23 + $0xe0] ss:$8 sps:$4 sm:$0xff]   ;;  %v1620_v45 = vld [vmem:[%s1907_s23 + $0xf4] ss:$8 sps:$4 sm:$0xff]   ;;  %v1622_v46 = vld [vmem:[%s1907_s23 + $0x70] ss:$8 sps:$4 sm:$0xff]  }
  0x4e   : > { %v1623_v47 = vld [vmem:[%s1907_s23 + $0xf0] ss:$8 sps:$4 sm:$0xff]  }
  0x50   : > { %1362 = vmatpush3.bf16.msra.mxu0 %v1569_v9  ;;  %1477 = vmatpush3.bf16.msra.mxu1 %v1569_v9 }
  0x51   : > { %1363 = vmatprep.subr.bf16.mxu0 %v1570_v10  ;;  %1470 = vmatprep.subr.bf16.mxu1 %v1570_v10 }
  0x54   : > { %1364 = vmatpush3.bf16.msra.mxu0 %v1571_v13  ;;  %1478 = vmatpush3.bf16.msra.mxu1 %v1571_v13 }
  0x55   : > { %1365 = vmatprep.subr.bf16.mxu0 %v1572_v14  ;;  %1471 = vmatprep.subr.bf16.mxu1 %v1572_v14 }
  0x58   : > { %1366 = vmatpush3.bf16.msra.mxu0 %v1573_v15  ;;  %1479 = vmatpush3.bf16.msra.mxu1 %v1573_v15 }
  0x59   : > { %1367 = vmatprep.subr.bf16.mxu0 %v1574_v16  ;;  %1472 = vmatprep.subr.bf16.mxu1 %v1574_v16 }
  0x5c   : > { %1368 = vmatpush3.bf16.msra.mxu0 %v1575_v17  ;;  %1480 = vmatpush3.bf16.msra.mxu1 %v1575_v17 }
  0x5f   : > { %628 = vmatmul.mubr.bf16.vlgmr.msra.gmra.mxu0 %v1576_v18  ;;  %692 = vmatmul.mubr.bf16.vlgmr.msra.gmra.mxu1 %v1579_v19 }
  0x60   : > { %635 = vmatprep.mubr.bf16.mxu0 %v1582_v20  ;;  %699 = vmatprep.mubr.bf16.mxu1 %v1584_v21 }
  0x67   : > { %636 = vmatmul.mubr.bf16.gmra.mxu0 %v1586_v22  ;;  %700 = vmatmul.mubr.bf16.gmra.mxu1 %v1587_v23 }
  0x68   : > { %643 = vmatprep.mubr.bf16.mxu0 %v1588_v24  ;;  %707 = vmatprep.mubr.bf16.mxu1 %v1590_v25 }
  0x6f   : > { %644 = vmatmul.mubr.bf16.gmra.mxu0 %v1592_v26  ;;  %708 = vmatmul.mubr.bf16.gmra.mxu1 %v1593_v27 }
  0x70   : > { %651 = vmatprep.mubr.bf16.mxu0 %v1594_v28  ;;  %715 = vmatprep.mubr.bf16.mxu1 %v1596_v29 }
  0x77   : > { %652 = vmatmul.mubr.bf16.gmra.mxu0 %v1598_v30  ;;  %716 = vmatmul.mubr.bf16.gmra.mxu1 %v1599_v31 }
  0x78   : > { %659 = vmatprep.mubr.bf16.mxu0 %v1600_v32  ;;  %723 = vmatprep.mubr.bf16.mxu1 %v1602_v33 }
  0x7f   : > { %660 = vmatmul.mubr.bf16.gmra.mxu0 %v1604_v34  ;;  %724 = vmatmul.mubr.bf16.gmra.mxu1 %v1605_v35 }
  0x80   : > { %667 = vmatprep.mubr.bf16.mxu0 %v1606_v36  ;;  %731 = vmatprep.mubr.bf16.mxu1 %v1608_v37 }
  0x87   : > { %668 = vmatmul.mubr.bf16.gmra.mxu0 %v1610_v38  ;;  %732 = vmatmul.mubr.bf16.gmra.mxu1 %v1611_v39 }
  0x88   : > { %675 = vmatprep.mubr.bf16.mxu0 %v1612_v40  ;;  %739 = vmatprep.mubr.bf16.mxu1 %v1614_v41 }
  0x8f   : > { %676 = vmatmul.mubr.bf16.gmra.mxu0 %v1616_v42  ;;  %740 = vmatmul.mubr.bf16.gmra.mxu1 %v1617_v43 }
  0x90   : > { %683 = vmatprep.mubr.bf16.mxu0 %v1618_v44  ;;  %747 = vmatprep.mubr.bf16.mxu1 %v1620_v45 }
  0x97   : > { %684 = vmatmul.mubr.bf16.gmra.mxu0 %v1622_v46  ;;  %748 = vmatmul.mubr.bf16.gmra.mxu1 %v1623_v47 }
 0x11f   : > { %v1369_v48 = vpop.f32.mrf.mxu0  ;;  %v1417_v49 = vpop.f32.mrf.mxu1 }
 0x121   : > { %v1370_v50 = vpop.f32.mrf.mxu0  ;;  %v1418_v51 = vpop.f32.mrf.mxu1 }
 0x122   : > { %v1371_v56 = vadd.f32 %v1370_v50, %v1369_v48  ;;  %v1419_v57 = vadd.f32 %v1418_v51, %v1417_v49 }
 0x123   : > { %v1372_v52 = vpop.f32.mrf.mxu0  ;;  %v1420_v53 = vpop.f32.mrf.mxu1 }
 0x125   : > { %v1373_v54 = vpop.f32.mrf.mxu0  ;;  %v1421_v55 = vpop.f32.mrf.mxu1 }
 0x126   : > { %v1374_v58 = vadd.f32 %v1373_v54, %v1372_v52  ;;  %v1422_v59 = vadd.f32 %v1421_v55, %v1420_v53 }
 0x127   : > { %v1375_v60 = vpop.f32.mrf.mxu0  ;;  %v1423_v61 = vpop.f32.mrf.mxu1 }
 0x128   : > { %v1261_v62 = vpack.c.bf16 %v1374_v58, %v1371_v56  ;;  %v1301_v63 = vpack.c.bf16 %v1422_v59, %v1419_v57 }
 0x129   : > { %v1376_v0 = vpop.f32.mrf.mxu0  ;;  %v1424_v1 = vpop.f32.mrf.mxu1 }
 0x12a   : > { %1262 = vst [vmem:[%s1950_s19] sm:$0xff] %v1261_v62   ;;  %1345 = vst [vmem:[%s1950_s19 + $0x40] sm:$0xff] %v1301_v63   ;;  %v1377_v6 = vadd.f32 %v1376_v0, %v1375_v60  ;;  %v1425_v7 = vadd.f32 %v1424_v1, %v1423_v61 }
 0x12b   : > { %v1378_v2 = vpop.f32.mrf.mxu0  ;;  %v1426_v3 = vpop.f32.mrf.mxu1 }
 0x12d   : > { %v1379_v4 = vpop.f32.mrf.mxu0  ;;  %v1427_v5 = vpop.f32.mrf.mxu1 }
 0x12e   : > { %v1380_v8 = vadd.f32 %v1379_v4, %v1378_v2  ;;  %v1428_v9 = vadd.f32 %v1427_v5, %v1426_v3 }
 0x12f   : > { %v1381_v10 = vpop.f32.mrf.mxu0  ;;  %v1429_v11 = vpop.f32.mrf.mxu1 }
 0x130   : > { %v1266_v12 = vpack.c.bf16 %v1380_v8, %v1377_v6  ;;  %v1306_v13 = vpack.c.bf16 %v1428_v9, %v1425_v7 }
 0x131   : > { %v1382_v14 = vpop.f32.mrf.mxu0  ;;  %v1430_v15 = vpop.f32.mrf.mxu1 }
 0x132   : > { %1338 = vst [vmem:[%s1950_s19 + $0x8] sm:$0xff] %v1266_v12   ;;  %1346 = vst [vmem:[%s1950_s19 + $0x48] sm:$0xff] %v1306_v13   ;;  %v1383_v20 = vadd.f32 %v1382_v14, %v1381_v10  ;;  %v1431_v21 = vadd.f32 %v1430_v15, %v1429_v11 }
 0x133   : > { %v1384_v16 = vpop.f32.mrf.mxu0  ;;  %v1432_v17 = vpop.f32.mrf.mxu1 }
 0x135   : > { %v1385_v18 = vpop.f32.mrf.mxu0  ;;  %v1433_v19 = vpop.f32.mrf.mxu1 }
 0x136   : > { %v1386_v22 = vadd.f32 %v1385_v18, %v1384_v16  ;;  %v1434_v23 = vadd.f32 %v1433_v19, %v1432_v17 }
 0x137   : > { %v1387_v24 = vpop.f32.mrf.mxu0  ;;  %v1435_v25 = vpop.f32.mrf.mxu1 }
 0x138   : > { %v1271_v26 = vpack.c.bf16 %v1386_v22, %v1383_v20  ;;  %v1311_v27 = vpack.c.bf16 %v1434_v23, %v1431_v21 }
 0x139   : > { %v1388_v28 = vpop.f32.mrf.mxu0  ;;  %v1436_v29 = vpop.f32.mrf.mxu1 }
 0x13a   : > { %1339 = vst [vmem:[%s1950_s19 + $0x10] sm:$0xff] %v1271_v26   ;;  %1347 = vst [vmem:[%s1950_s19 + $0x50] sm:$0xff] %v1311_v27   ;;  %v1389_v34 = vadd.f32 %v1388_v28, %v1387_v24  ;;  %v1437_v35 = vadd.f32 %v1436_v29, %v1435_v25 }
 0x13b   : > { %v1390_v30 = vpop.f32.mrf.mxu0  ;;  %v1438_v31 = vpop.f32.mrf.mxu1 }
 0x13d   : > { %v1391_v32 = vpop.f32.mrf.mxu0  ;;  %v1439_v33 = vpop.f32.mrf.mxu1 }
 0x13e   : > { %v1392_v36 = vadd.f32 %v1391_v32, %v1390_v30  ;;  %v1440_v37 = vadd.f32 %v1439_v33, %v1438_v31 }
 0x13f   : > { %v1393_v38 = vpop.f32.mrf.mxu0  ;;  %v1441_v39 = vpop.f32.mrf.mxu1 }
 0x140   : > { %v1276_v40 = vpack.c.bf16 %v1392_v36, %v1389_v34  ;;  %v1316_v41 = vpack.c.bf16 %v1440_v37, %v1437_v35 }
 0x141   : > { %v1394_v42 = vpop.f32.mrf.mxu0  ;;  %v1442_v43 = vpop.f32.mrf.mxu1 }
 0x142   : > { %1340 = vst [vmem:[%s1950_s19 + $0x18] sm:$0xff] %v1276_v40   ;;  %1348 = vst [vmem:[%s1950_s19 + $0x58] sm:$0xff] %v1316_v41   ;;  %v1395_v48 = vadd.f32 %v1394_v42, %v1393_v38  ;;  %v1443_v49 = vadd.f32 %v1442_v43, %v1441_v39 }
 0x143   : > { %v1396_v44 = vpop.f32.mrf.mxu0  ;;  %v1444_v45 = vpop.f32.mrf.mxu1 }
 0x145   : > { %v1397_v46 = vpop.f32.mrf.mxu0  ;;  %v1445_v47 = vpop.f32.mrf.mxu1 }
 0x146   : > { %v1398_v50 = vadd.f32 %v1397_v46, %v1396_v44  ;;  %v1446_v51 = vadd.f32 %v1445_v47, %v1444_v45 }
 0x147   : > { %v1399_v52 = vpop.f32.mrf.mxu0  ;;  %v1447_v53 = vpop.f32.mrf.mxu1 }
 0x148   : > { %v1281_v54 = vpack.c.bf16 %v1398_v50, %v1395_v48  ;;  %v1321_v55 = vpack.c.bf16 %v1446_v51, %v1443_v49 }
 0x149   : > { %v1400_v56 = vpop.f32.mrf.mxu0  ;;  %v1448_v57 = vpop.f32.mrf.mxu1 }
 0x14a   : > { %1341 = vst [vmem:[%s1950_s19 + $0x20] sm:$0xff] %v1281_v54   ;;  %1349 = vst [vmem:[%s1950_s19 + $0x60] sm:$0xff] %v1321_v55   ;;  %v1401_v62 = vadd.f32 %v1400_v56, %v1399_v52  ;;  %v1449_v63 = vadd.f32 %v1448_v57, %v1447_v53 }
 0x14b   : > { %v1402_v58 = vpop.f32.mrf.mxu0  ;;  %v1450_v59 = vpop.f32.mrf.mxu1 }
 0x14d   : > { %v1403_v60 = vpop.f32.mrf.mxu0  ;;  %v1451_v61 = vpop.f32.mrf.mxu1 }
 0x14e   : > { %v1404_v0 = vadd.f32 %v1403_v60, %v1402_v58  ;;  %v1452_v1 = vadd.f32 %v1451_v61, %v1450_v59 }
 0x14f   : > { %v1405_v2 = vpop.f32.mrf.mxu0  ;;  %v1453_v3 = vpop.f32.mrf.mxu1 }
 0x150   : > { %v1286_v4 = vpack.c.bf16 %v1404_v0, %v1401_v62  ;;  %v1326_v5 = vpack.c.bf16 %v1452_v1, %v1449_v63 }
 0x151   : > { %v1406_v6 = vpop.f32.mrf.mxu0  ;;  %v1454_v7 = vpop.f32.mrf.mxu1 }
 0x152   : > { %1342 = vst [vmem:[%s1950_s19 + $0x28] sm:$0xff] %v1286_v4   ;;  %1350 = vst [vmem:[%s1950_s19 + $0x68] sm:$0xff] %v1326_v5   ;;  %v1407_v12 = vadd.f32 %v1406_v6, %v1405_v2  ;;  %v1455_v13 = vadd.f32 %v1454_v7, %v1453_v3 }
 0x153   : > { %v1408_v8 = vpop.f32.mrf.mxu0  ;;  %v1456_v9 = vpop.f32.mrf.mxu1 }
 0x155   : > { %v1409_v10 = vpop.f32.mrf.mxu0  ;;  %v1457_v11 = vpop.f32.mrf.mxu1 }
 0x156   : > { %v1410_v14 = vadd.f32 %v1409_v10, %v1408_v8  ;;  %v1458_v15 = vadd.f32 %v1457_v11, %v1456_v9 }
 0x157   : > { %v1411_v16 = vpop.f32.mrf.mxu0  ;;  %v1459_v17 = vpop.f32.mrf.mxu1 }
 0x158   : > { %v1291_v18 = vpack.c.bf16 %v1410_v14, %v1407_v12  ;;  %v1331_v19 = vpack.c.bf16 %v1458_v15, %v1455_v13 }
 0x159   : > { %v1412_v20 = vpop.f32.mrf.mxu0  ;;  %v1460_v21 = vpop.f32.mrf.mxu1 }
 0x15a   : > { %1343 = vst [vmem:[%s1950_s19 + $0x30] sm:$0xff] %v1291_v18   ;;  %1351 = vst [vmem:[%s1950_s19 + $0x70] sm:$0xff] %v1331_v19   ;;  %v1413_v26 = vadd.f32 %v1412_v20, %v1411_v16  ;;  %v1461_v27 = vadd.f32 %v1460_v21, %v1459_v17 }
 0x15b   : > { %v1414_v22 = vpop.f32.mrf.mxu0  ;;  %v1462_v23 = vpop.f32.mrf.mxu1 }
 0x15d   : > { %v1415_v24 = vpop.f32.mrf.mxu0  ;;  %v1463_v25 = vpop.f32.mrf.mxu1 }
 0x15e   : > { %v1416_v28 = vadd.f32 %v1415_v24, %v1414_v22  ;;  %v1464_v29 = vadd.f32 %v1463_v25, %v1462_v23 }
 0x160   : > { %v1296_v30 = vpack.c.bf16 %v1416_v28, %v1413_v26  ;;  %v1336_v31 = vpack.c.bf16 %v1464_v29, %v1461_v27 }
 0x162   : > { %1344 = vst [vmem:[%s1950_s19 + $0x38] sm:$0xff] %v1296_v30   ;;  %1352 = vst [vmem:[%s1950_s19 + $0x78] sm:$0xff] %v1336_v31  }
 0x163   : > { %1691 = shalt.err (!%p1688_p5)
}
 0x164   : > { %s1692_s6 = scalar_lea.hbm %s1971_s18, 2048  ;;  %s1696_s16 = scalar_lea.hbm %s2025_s2, 4096 }
 0x165   : > { %p1693_p7 = scmp.ne.s32.totalorder %s1971_s18, %s1692_s6  ;;  %p1697_p9 = scmp.lt.s32.totalorder %s1971_s18, %s2025_s2 }
 0x166   : > { %p1698_p11 = scmp.lt.s32.totalorder %s1696_s16, %s1692_s6 }
 0x167   : > { %p1694_p6 = pnand %p1693_p7, %p1875_p13 }
 0x168   : > { %p1699_p12 = por %p1698_p11, %p1697_p9 }
 0x169   : > { %p1695_p4 = pneg %p1694_p6 }
 0x16b   : > { %p1700_p1 = pnand %p1699_p12, %p1695_p4 }
 0x16d   : > { %1703 = shalt.err (!%p1700_p1)
}
 0x16e   : > { %s1771_s17 = smov 64   ;;  %s1772_s19 = smov 4  }
 0x16f   : > { %1487 = dma.vmem_to_hbm [thread:$0]  (%p1875_p13), %s1973_s24, 2048, %s1971_s18, %s1016_s12, %s1771_s17, %s1771_s17, %s1772_s19  }
 0x170 PF: > { %s1044_s21 = sand.u32 1, %s1742_s9   ;;  %p2037_p8 = scmp.ne.s32.totalorder %s2030_s20, 0 }
 0x171   : > { %p2038_p10 = scmp.ge.s32.totalorder %s1762_s14, 2  ;;  %s1045_s26 = scalar_lea.sflag [#allocation5], %s1044_s21 }
 0x173   : > { %p1498_p0 = pnand %p2038_p10, %p2037_p8 }
 0x175   : > { %p1499_p2 = pneg %p1498_p0 }
 0x177   : > { %1737 = dma.done.wait (%p1499_p2), %s1045_s26, 2048  }
 0x178   : > { %1739 = vsyncadd (%p1499_p2), %s1045_s26, 4294965248  ;;  %s19_s14 = sadd.s32 1, %s1762_s14   ;;  %s2039_s9 = smov %s1746_s10 }
 0x179   : > { %p16_p3 = scmp.ge.s32.totalorder %s19_s14, 4   ;;  %s2040_s10 = smov %s1750_s11 }
 0x17a   : > { %s2041_s11 = smov %s1884_s15  ;;  %s2042_s12 = smov %s1758_s13 }
 0x17b   : > { %s2043_s13 = smov %s2045_s25  ;;  %18 = sbr.rel (!%p16_p3) target bundleno = 7 (0x7), region = 86 }
 0x180   :  { %1050 = vsyncpa [#allocation4], 1 }
 0x181   :  { %1052 = vsyncpa [#allocation4 + $0x1], 1 }
 0x182   :  { %1053 = vsyncpa [#allocation7], 1 }
 0x183   :  { %1054 = vsyncpa [#allocation5], 1 }
 0x184   :  { %1056 = vsyncpa [#allocation5 + $0x1], 1 }

</bundles_post_ra>
